<compile_context>
chip_gen: v5e
topology: v5e:2x2
jax: 0.10.0
libtpu: 0.0.40
codegen_flags: <defaults>
</compile_context>

<pallas_src>
import jax
import jax.numpy as jnp
from jax.experimental import pallas as pl
from jax.experimental.pallas import tpu as pltpu


def _round_up(a: int, b: int) -> int:
    return (a + b - 1) // b * b


def _patch_embed_kernel(x_ref, w_ref, o_ref):
    # Cast the f32 x tile to bf16 on the VPU (hidden under the MXU matmul),
    # contract against the resident bf16 weight with f32 accumulation, and
    # cast only on the final store.
    x_bf16 = x_ref[...].astype(jnp.bfloat16)
    o_ref[...] = jnp.dot(
        x_bf16, w_ref[...], preferred_element_type=jnp.float32
    ).astype(o_ref.dtype)


def qwen2_5_vision_patch_embed(x, w_bf16, *, tile_l=512, out_dtype=jnp.bfloat16):
    """x: (L, K) float32 tokens, w_bf16: (K, H) bfloat16 weight. Returns (L, H)."""
    L, K = x.shape
    Kw, H = w_bf16.shape
    assert K == Kw, f"contraction mismatch: x K={K}, w K={Kw}"

    # L tile: big enough to fill the MXU / amortize the ~0.35 us per-grid-step
    # overhead, a multiple of 32 (covers f32 input sublanes and bf16 packed
    # output sublanes), and never larger than the (rounded-up) input so small
    # inputs stay a single block.
    tile = min(tile_l, _round_up(L, 32))
    tile = _round_up(max(tile, 32), 32)
    num_tiles = pl.cdiv(L, tile)  # ragged last block allowed; Pallas masks it.

    out_itemsize = jnp.dtype(out_dtype).itemsize
    cost = pl.CostEstimate(
        flops=2 * L * K * H,
        transcendentals=0,
        bytes_accessed=(
            L * K * x.dtype.itemsize   # f32 x streamed once
            + K * H * 2                # bf16 weight, DMA'd once
            + L * H * out_itemsize     # output stream
        ),
    )

    return pl.pallas_call(
        _patch_embed_kernel,
        out_shape=jax.ShapeDtypeStruct((L, H), out_dtype),
        grid_spec=pltpu.PrefetchScalarGridSpec(
            num_scalar_prefetch=0,
            grid=(num_tiles,),
            in_specs=[
                # x tile: full K (== array dim, so no 128-divisibility needed).
                pl.BlockSpec((tile, K), lambda i: (i, 0)),
                # Weight: constant index_map -> resident; single buffer, the
                # second pipeline buffer would be pure VMEM waste.
                pl.BlockSpec((K, H), lambda i: (0, 0),
                             pipeline_mode=pl.Buffered(1)),
            ],
            out_specs=pl.BlockSpec((tile, H), lambda i: (i, 0)),
        ),
        compiler_params=pltpu.CompilerParams(
            # Independent L tiles: shard grid steps across TensorCores (v7x).
            dimension_semantics=("parallel",),
        ),
        cost_estimate=cost,
    )(x, w_bf16)


class Qwen25VisionPatchEmbedPallas:
    """JAX/Pallas equivalent of the PyTorch Qwen2_5_VisionPatchEmbed module."""

    def __init__(
        self,
        patch_size: int = 14,
        temporal_patch_size: int = 2,
        in_channels: int = 3,
        hidden_size: int = 1152,
        *,
        key=None,
    ):
        self.patch_size = patch_size
        self.temporal_patch_size = temporal_patch_size
        self.in_channels = in_channels
        self.hidden_size = hidden_size
        if key is None:
            key = jax.random.PRNGKey(0)
        # Conv3d weight shape: (hidden, in_channels, t, p, p), no bias.
        w = jax.random.normal(
            key,
            (hidden_size, in_channels, temporal_patch_size, patch_size, patch_size),
            dtype=jnp.float32,
        ) * 0.02
        # Flatten in C-contiguous order -> (hidden, K), transpose -> (K, hidden).
        self.w_flat = w.reshape(hidden_size, -1).T          # f32 (reference)
        self.w_bf16 = self.w_flat.astype(jnp.bfloat16)      # precomputed MXU operand

    def __call__(self, x, *, tile_l: int = 512, out_dtype=jnp.bfloat16):
        # x: (L, C) with C = in_channels * t * p * p
        L, C = x.shape
        assert C == self.w_bf16.shape[0]
        return qwen2_5_vision_patch_embed(
            x, self.w_bf16, tile_l=tile_l, out_dtype=out_dtype
        )


if __name__ == "__main__":
    # Small, module-consistent shapes:
    #   patch_size=4, temporal_patch_size=2, in_channels=3, hidden_size=128
    #   => K = 3*2*4*4 = 96, L = 40 tokens (not a multiple of the small tile,
    #   to exercise the ragged/masked last block path).
    patch_size = 4
    temporal_patch_size = 2
    in_channels = 3
    hidden_size = 128
    L = 40
    K = in_channels * temporal_patch_size * patch_size * patch_size

    key = jax.random.PRNGKey(0)
    k_w, k_x = jax.random.split(key)

    module = Qwen25VisionPatchEmbedPallas(
        patch_size=patch_size,
        temporal_patch_size=temporal_patch_size,
        in_channels=in_channels,
        hidden_size=hidden_size,
        key=k_w,
    )
    x = jax.random.normal(k_x, (L, K), dtype=jnp.float32)

    # Default path (single tile) and a small-tile path (2 tiles, ragged last).
    out = jax.block_until_ready(module(x))
    out_ragged = jax.block_until_ready(module(x, tile_l=32))

    assert out.shape == (L, hidden_size)
    assert out.dtype == jnp.bfloat16
    assert out_ragged.shape == (L, hidden_size)

    # Reference 1: same bf16-operand / f32-accumulate math as the kernel
    # (differences are only the final bf16 output rounding).
    ref_acc = jnp.dot(
        x.astype(jnp.bfloat16), module.w_bf16, preferred_element_type=jnp.float32
    )
    assert jnp.allclose(out.astype(jnp.float32), ref_acc, atol=2e-3, rtol=2e-2)
    assert jnp.allclose(out_ragged.astype(jnp.float32), ref_acc, atol=2e-3, rtol=2e-2)
    assert jnp.array_equal(out, out_ragged)

    # Reference 2: full-precision Conv3d-equivalent matmul (loose tolerance:
    # bf16 MXU operands + bf16 output).
    ref_f32 = x @ module.w_flat
    assert jnp.allclose(out.astype(jnp.float32), ref_f32, atol=1.5e-2, rtol=5e-2)

    print("KERNEL_OK")
</pallas_src>

<mosaic_0001>
module attributes {stable_mosaic.version = 11 : i64} {
  func.func @_patch_embed_kernel(%arg0: i32, %arg1: memref<64x96xf32, #tpu.memory_space<vmem>>, %arg2: memref<96x128xbf16, #tpu.memory_space<vmem>>, %arg3: memref<64x128xbf16, #tpu.memory_space<vmem>>) attributes {dimension_semantics = [#tpu.dimension_semantics<parallel>], iteration_bounds = array<i64: 1>, scalar_prefetch = 0 : i64, scratch_operands = 0 : i64, tpu.core_type = #tpu.core_type<tc>, window_params = [{transform_indices = @transform_0, window_bounds = array<i64: 64, 96>}, {pipeline_mode = #tpu.pipeline_mode<synchronous>, transform_indices = @transform_1, window_bounds = array<i64: 96, 128>}, {transform_indices = @transform_2, window_bounds = array<i64: 64, 128>}]} {
    %c0 = arith.constant 0 : index
    %c0_0 = arith.constant 0 : index
    %0 = vector.load %arg1[%c0, %c0_0] : memref<64x96xf32, #tpu.memory_space<vmem>>, vector<64x96xf32>
    %1 = arith.truncf %0 : vector<64x96xf32> to vector<64x96xbf16>
    %c0_1 = arith.constant 0 : index
    %c0_2 = arith.constant 0 : index
    %2 = vector.load %arg2[%c0_1, %c0_2] : memref<96x128xbf16, #tpu.memory_space<vmem>>, vector<96x128xbf16>
    %cst = arith.constant dense<0.000000e+00> : vector<64x128xf32>
    %3 = tpu.matmul %1, %2, %cst {dimension_numbers = #tpu.dot_dimension_numbers<[1], [0], [0], [1], [0, 0, 1, 1], [], []>} : vector<64x96xbf16>, vector<96x128xbf16>, vector<64x128xf32> -> vector<64x128xf32>
    %4 = arith.truncf %3 : vector<64x128xf32> to vector<64x128xbf16>
    %c0_3 = arith.constant 0 : index
    %c0_4 = arith.constant 0 : index
    %5 = vector.load %arg3[%c0_3, %c0_4] : memref<64x128xbf16, #tpu.memory_space<vmem>>, vector<64x128xbf16>
    tpu.vector_store %arg3[%c0_3, %c0_4], %4 {strides = array<i32>} : memref<64x128xbf16, #tpu.memory_space<vmem>>, vector<64x128xbf16>,
    return
  }
  func.func @transform_0(%arg0: i32) -> (i32, i32) {
    %c0_i32 = arith.constant 0 : i32
    %c0_i32_0 = arith.constant 0 : i32
    return %arg0, %c0_i32 : i32, i32
  }
  func.func @transform_1(%arg0: i32) -> (i32, i32) {
    %c0_i32 = arith.constant 0 : i32
    %c0_i32_0 = arith.constant 0 : i32
    %c0_i32_1 = arith.constant 0 : i32
    return %c0_i32, %c0_i32_0 : i32, i32
  }
  func.func @transform_2(%arg0: i32) -> (i32, i32) {
    %c0_i32 = arith.constant 0 : i32
    %c0_i32_0 = arith.constant 0 : i32
    return %arg0, %c0_i32 : i32, i32
  }
}

</mosaic_0001>

<bundles_post_ra>
// kernel: tpu_custom_call.1
= control target key start
LH: loop header
LB: loop body
LE: loop exit
PB: predicated region body
PF: predicated region fallthrough
CT: control target
= control target key end

     0   :  { %7 = vsyncpa [#allocation3], 0  ;;  %s380_s0 = inlined_call_operand.hbm [shape: f32[40,96], index: 0, kind: input, shape index: {}]   ;;  %s381_s1 = inlined_call_operand.hbm [shape: bf16[96,128], index: 1, kind: input, shape index: {}]   ;;  %s382_s2 = inlined_call_operand.hbm [shape: bf16[40,128], index: 2, kind: output, shape index: {}]  }
   0x1   :  { %8 = vsyncpa [#allocation6], 0 }
   0x2   :  { %9 = vsyncpa [#allocation4], 0 }
   0x3   :  { %13 = vsyncadd [#allocation3], 384  ;;  %s14_s11 = sshll.u32 %s380_s0, 4  ;;  %s343_s12 = smov [#allocation2]   ;;  %s15_s11 = int_to_ptr.hbm [resolvable:$true] %s14_s11 }
   0x4   :  { %s16_s13 = sshll.u32 %s343_s12, 4  ;;  %s27_s16 = sshll.u32 %s381_s1, 4  ;;  %s17_s13 = int_to_ptr.vmem [resolvable:$true] %s16_s13  ;;  %s28_s16 = int_to_ptr.hbm [resolvable:$true] %s27_s16 }
   0x5   :  { %s344_s17 = smov 128   ;;  %s345_s18 = smov 8  }
   0x6   :  { %22 = dma.hbm_to_vmem [thread:$0]  %s15_s11, 640, %s17_s13, [#allocation3], %s344_s17, %s344_s17, %s345_s18  }
   0x7   :  { %s346_s19 = smov [#allocation5]   ;;  %s347_s21 = smov 64  }
   0x8   :  { %s29_s20 = sshll.u32 %s346_s19, 4  ;;  %s348_s22 = smov 4   ;;  %s30_s20 = int_to_ptr.vmem [resolvable:$true] %s29_s20 }
   0x9   :  { %35 = dma.hbm_to_vmem [thread:$0]  %s28_s16, 768, %s30_s20, [#allocation6], %s347_s21, %s347_s21, %s348_s22  }
   0xa   :  { %337 = dma.done.wait [#allocation3], 1024  }
   0xb   :  { %338 = vsyncadd [#allocation3], 4294966272 }
   0xc   :  { %339 = dma.done.wait [#allocation6], 768  }
   0xd   :  { %340 = vsyncadd [#allocation6], 4294966528  ;;  %v216_v0 = vld [vmem:[#allocation5 + $0x28] sm:$0xff]  ;;  %v215_v1 = vld [vmem:[#allocation5 + $0x20] sm:$0xff]  ;;  %vm105_vm0 = vcmask 785408  }
   0xe   :  { %120 = vmatpush.bf16.msra.mxu0 %v216_v0  ;;  %240 = vmatpush.bf16.msra.mxu1 %v216_v0  ;;  %v214_v2 = vld [vmem:[#allocation5 + $0x18] sm:$0xff]  ;;  %v213_v3 = vld [vmem:[#allocation5 + $0x10] sm:$0xff]  ;;  %v212_v4 = vld [vmem:[#allocation5 + $0x8] sm:$0xff] }
   0xf   :  { %241 = vmatpush.bf16.msra.mxu2 %v216_v0  ;;  %242 = vmatpush.bf16.msra.mxu3 %v216_v0  ;;  %v211_v5 = vld [vmem:[#allocation5] sm:$0xff]  ;;  %v46_v7 = vld [vmem:[#allocation2 + $0x8] sm:$0xff]  ;;  %v47_v8 = vld [vmem:[#allocation2 + $0x10] sm:$0xff] }
  0x10   :  { %v45_v6 = vld [vmem:[#allocation2] sm:$0xff]  ;;  %v48_v9 = vld [vmem:[#allocation2 + $0x18] sm:$0xff]  ;;  %v50_v11 = vld [vmem:[#allocation2 + $0x28] sm:$0xff] }
  0x11   :  { %v49_v10 = vld [vmem:[#allocation2 + $0x20] sm:$0xff]  ;;  %v51_v12 = vld [vmem:[#allocation2 + $0x30] sm:$0xff]  ;;  %v52_v13 = vld [vmem:[#allocation2 + $0x38] sm:$0xff]  ;;  %v53_v14 = vpack.c.bf16 %v46_v7, %v45_v6  ;;  %v54_v15 = vpack.c.bf16 %v48_v9, %v47_v8 }
  0x12   :  { %121 = vmatpush.bf16.msra.mxu0 %v215_v1  ;;  %243 = vmatpush.bf16.msra.mxu1 %v215_v1  ;;  %v55_v16 = vpack.c.bf16 %v50_v11, %v49_v10  ;;  %v56_v17 = vpack.c.bf16 %v52_v13, %v51_v12 }
  0x13   :  { %244 = vmatpush.bf16.msra.mxu2 %v215_v1  ;;  %245 = vmatpush.bf16.msra.mxu3 %v215_v1 }
  0x16   :  { %122 = vmatpush.bf16.msra.mxu0 %v214_v2  ;;  %246 = vmatpush.bf16.msra.mxu1 %v214_v2 }
  0x17   :  { %247 = vmatpush.bf16.msra.mxu2 %v214_v2  ;;  %248 = vmatpush.bf16.msra.mxu3 %v214_v2 }
  0x1a   :  { %123 = vmatpush.bf16.msra.mxu0 %v213_v3  ;;  %249 = vmatpush.bf16.msra.mxu1 %v213_v3 }
  0x1b   :  { %250 = vmatpush.bf16.msra.mxu2 %v213_v3  ;;  %251 = vmatpush.bf16.msra.mxu3 %v213_v3 }
  0x1e   :  { %124 = vmatpush.bf16.msra.mxu0 %v212_v4  ;;  %252 = vmatpush.bf16.msra.mxu1 %v212_v4 }
  0x1f   :  { %253 = vmatpush.bf16.msra.mxu2 %v212_v4  ;;  %254 = vmatpush.bf16.msra.mxu3 %v212_v4 }
  0x22   :  { %125 = vmatpush.bf16.msra.mxu0 %v211_v5  ;;  %255 = vmatpush.bf16.msra.mxu1 %v211_v5 }
  0x23   :  { %256 = vmatpush.bf16.msra.mxu2 %v211_v5  ;;  %257 = vmatpush.bf16.msra.mxu3 %v211_v5 }
  0x25   :  { %207 = vmatmul.msk.bf16.vlgmr.msra.gmra.mxu0 %vm105_vm0, %v53_v14  ;;  %208 = vmatmul.msk.bf16.vlgmr.msra.gmra.mxu1 %vm105_vm0, %v54_v15 }
  0x26   :  { %209 = vmatmul.msk.bf16.vlgmr.msra.gmra.mxu2 %vm105_vm0, %v55_v16  ;;  %210 = vmatmul.msk.bf16.vlgmr.msra.gmra.mxu3 %vm105_vm0, %v56_v17 }
  0xa2   :  { %v127_v18 = vpop.f32.mrf.mxu0  ;;  %v132_v19 = vpop.f32.mrf.mxu1 }
  0xa9   :  { %v137_v20 = vpop.f32.mrf.mxu2  ;;  %v142_v21 = vpop.f32.mrf.mxu3 }
  0xaa   :  { %v129_v22 = vpop.f32.mrf.mxu0  ;;  %v134_v23 = vpop.f32.mrf.mxu1 }
  0xab   :  { %v220_v24 = vpack.c.bf16 %v129_v22, %v127_v18  ;;  %v225_v25 = vpack.c.bf16 %v134_v23, %v132_v19 }
  0xad   :  { %221 = vst [vmem:[#allocation7] sm:$0xff] %v220_v24  }
  0xae   :  { %237 = vst [vmem:[#allocation7 + $0x8] sm:$0xff] %v225_v25  }
  0xb1   :  { %v139_v26 = vpop.f32.mrf.mxu2  ;;  %v144_v27 = vpop.f32.mrf.mxu3 }
  0xb2   :  { %v230_v28 = vpack.c.bf16 %v139_v26, %v137_v20  ;;  %v235_v29 = vpack.c.bf16 %v144_v27, %v142_v21 }
  0xb4   :  { %238 = vst [vmem:[#allocation7 + $0x10] sm:$0xff] %v230_v28  }
  0xb5   :  { %239 = vst [vmem:[#allocation7 + $0x18] sm:$0xff] %v235_v29  }
  0xb6   :  { %166 = vsyncadd [#allocation4], 192  ;;  %s169_s23 = sshll.u32 %s382_s2, 4  ;;  %s349_s24 = smov [#allocation7]   ;;  %s170_s23 = int_to_ptr.hbm [resolvable:$true] %s169_s23 }
  0xb7   :  { %s167_s25 = sshll.u32 %s349_s24, 4  ;;  %s168_s25 = int_to_ptr.vmem [resolvable:$true] %s167_s25 }
  0xb8   :  { %175 = dma.vmem_to_hbm [thread:$0]  %s168_s25, 320, %s170_s23, [#allocation4], %s347_s21, %s347_s21, %s348_s22  }
  0xb9   :  { %341 = dma.done.wait [#allocation4], 512  }
  0xba   :  { %342 = vsyncadd [#allocation4], 4294966784 }
  0xbb   :  { %180 = vsyncpa [#allocation3], 1 }
  0xbc   :  { %181 = vsyncpa [#allocation6], 1 }
  0xbd   :  { %182 = vsyncpa [#allocation4], 1 }

</bundles_post_ra>
